<compile_context>
chip_gen: v7x
topology: tpu7x:2x2x1
jax: 0.10.0
libtpu: 0.0.40
codegen_flags: <defaults>
</compile_context>

<pallas_src>
import math

import jax
import jax.numpy as jnp
from jax import lax
from jax.experimental import pallas as pl
from jax.experimental.pallas import tpu as pltpu

_H = 64            # hidden width of the torch module
_LANE = 128
_TARGET_TILE = 2048   # batch-lanes per grid step; VMEM-safe on v7x (64 MiB part)


def _round_up(x, m):
    return ((x + m - 1) // m) * m


def _actor_kernel(state_ref, noise_ref,
                  w_in_ref, b_in_ref,
                  w_hid_ref, b_hid_ref,
                  w_out_ref, b_out_ref,
                  out_ref):
    A = noise_ref.shape[0]

    x = state_ref[...].astype(jnp.bfloat16)          # (S,  Bt)
    noise = noise_ref[...]                           # (A,  Bt) f32

    # ---- fused first layer [mean-branch ; std-branch]: (2H,S)@(S,Bt) -> (2H,Bt)
    y = jnp.dot(w_in_ref[...], x,
                preferred_element_type=jnp.float32) + b_in_ref[...]
    y = jnp.maximum(y, 0.0)

    # ---- two hidden layers, block-diag(mean MLP | identity) so the std
    #      branch rides through unchanged (identity matmul, f32 accumulation).
    y = jnp.dot(w_hid_ref[0], y.astype(jnp.bfloat16),
                preferred_element_type=jnp.float32) + b_hid_ref[0]
    y = jnp.maximum(y, 0.0)
    y = jnp.dot(w_hid_ref[1], y.astype(jnp.bfloat16),
                preferred_element_type=jnp.float32) + b_hid_ref[1]
    y = jnp.maximum(y, 0.0)

    # ---- fused output head block-diag(wf3 | wls1): (2A,2H)@(2H,Bt) -> (2A,Bt)
    head = jnp.dot(w_out_ref[...], y.astype(jnp.bfloat16),
                   preferred_element_type=jnp.float32) + b_out_ref[...]
    am_pre = head[:A, :]                             # (A, Bt) mean pre-activation
    ls = head[A:, :]                                 # (A, Bt) std  pre-softplus

    # ---- per-row activations: row 0 -> tanh, row 1 -> sigmoid.
    # sigmoid(x) = 0.5*(1 + tanh(x/2))  => a single EUP tanh pass per tile.
    row = lax.broadcasted_iota(jnp.int32, am_pre.shape, dimension=0)
    scale = jnp.where(row == 1, 0.5, 1.0)
    t = jnp.tanh(am_pre * scale)
    if A == 2:                                       # no identity rows: single select
        am = jnp.where(row == 0, t, 0.5 * (1.0 + t))
    else:
        am = jnp.where(row == 0, t,
                       jnp.where(row == 1, 0.5 * (1.0 + t), am_pre))

    # ---- std branch epilogue; sigma is the Normal scale (std + 1e-8)
    sigma = jax.nn.softplus(ls) + 1e-8

    # ---- reparameterized sample + per-row clamps (row0: [0.3,1], row1: [-1,1])
    sample = am + sigma * noise
    if A == 2:
        lo = jnp.where(row == 0, 0.3, -1.0)
        sample = jnp.clip(sample, lo, 1.0)
    else:
        sample = jnp.where(row == 0, jnp.clip(sample, 0.3, 1.0),
                           jnp.where(row == 1, jnp.clip(sample, -1.0, 1.0), sample))

    # ---- log_prob of the clamped sample under Normal(am, sigma)
    inv_sigma = pl.reciprocal(sigma, approx=True)    # EUP vrcp, ~2^-12 rel err
    z = (sample - am) * inv_sigma
    logprob = -0.5 * z * z - jnp.log(sigma) - 0.5 * math.log(2.0 * math.pi)

    # ---- lane-dense output slab (4A, Bt): rows = [sample | logprob | mean | std]
    out_ref[...] = jnp.concatenate([sample, logprob, am, sigma], axis=0)


def pack_params(params):
    """One-time packing into feature-major fused blobs.

    Call at init / parameter-update time, NOT per forward step."""
    H = _H
    A = params["wf3"].shape[1]

    # first layer: rows [w1^T ; wls^T] -> (2H, S), bf16 for the MXU
    w_in = jnp.concatenate([params["w1"].T, params["wls"].T],
                           axis=0).astype(jnp.bfloat16)                       # (2H, S)
    b_in = jnp.concatenate([params["b1"], params["bls"]])[:, None]            # (2H, 1) f32

    # hidden layers: block-diag(wf_k^T, I) so std branch passes through exactly
    eye = jnp.eye(H, dtype=jnp.float32)
    zblk = jnp.zeros((H, H), jnp.float32)
    w_h1 = jnp.block([[params["wf1"].T, zblk], [zblk, eye]]).astype(jnp.bfloat16)
    w_h2 = jnp.block([[params["wf2"].T, zblk], [zblk, eye]]).astype(jnp.bfloat16)
    w_hid = jnp.stack([w_h1, w_h2])                                           # (2, 2H, 2H)
    zb = jnp.zeros((H,), jnp.float32)
    b_hid = jnp.stack([jnp.concatenate([params["bf1"], zb]),
                       jnp.concatenate([params["bf2"], zb])])[..., None]      # (2, 2H, 1) f32

    # output heads: block-diag(wf3^T, wls1^T) -> (2A, 2H)
    w_out = jnp.zeros((2 * A, 2 * H), jnp.float32)
    w_out = w_out.at[:A, :H].set(params["wf3"].T).at[A:, H:].set(params["wls1"].T)
    w_out = w_out.astype(jnp.bfloat16)
    b_out = jnp.concatenate([params["bf3"], params["bls1"]])[:, None]         # (2A, 1) f32

    return {"w_in": w_in, "b_in": b_in, "w_hid": w_hid, "b_hid": b_hid,
            "w_out": w_out, "b_out": b_out}


@jax.jit
def actor_forward(state, noise, packed):
    """state: (B, S) f32, noise: (B, A) f32 standard-normal, packed: pack_params(...).

    Returns (action_sample, action_logprob, mean, std) with std = softplus(.)+1e-8,
    i.e. exactly the scale of the Normal the torch module builds."""
    B, S = state.shape
    A = noise.shape[1]
    H = _H

    # feature-major: batch in lanes
    state_t = state.T                                # (S, B)
    noise_t = noise.T                                # (A, B)

    # ---------- batch-lane tiling ----------
    if B <= _LANE:
        B_TILE = B                                   # block == full dim -> allowed
        Bp = B
    else:
        Bp = _round_up(B, _LANE)
        # >= 2 grid steps so both v7x TensorCores get work; cap tile at 2048 lanes
        B_TILE = min(_TARGET_TILE, max(_LANE, _round_up(Bp // 2, _LANE)))
        Bp = _round_up(Bp, B_TILE)

    if Bp != B:
        pad = Bp - B
        state_t = jnp.pad(state_t, ((0, 0), (0, pad)))
        noise_t = jnp.pad(noise_t, ((0, 0), (0, pad)))

    grid = (Bp // B_TILE,)

    in_specs = [
        pl.BlockSpec((S, B_TILE), lambda i: (0, i)),            # state^T (tiled)
        pl.BlockSpec((A, B_TILE), lambda i: (0, i)),            # noise^T (tiled)
        pl.BlockSpec((2 * H, S), lambda i: (0, 0)),             # w_in    (VMEM resident)
        pl.BlockSpec((2 * H, 1), lambda i: (0, 0)),             # b_in
        pl.BlockSpec((2, 2 * H, 2 * H), lambda i: (0, 0, 0)),   # w_hid
        pl.BlockSpec((2, 2 * H, 1), lambda i: (0, 0, 0)),       # b_hid
        pl.BlockSpec((2 * A, 2 * H), lambda i: (0, 0)),         # w_out
        pl.BlockSpec((2 * A, 1), lambda i: (0, 0)),             # b_out
    ]
    out_specs = pl.BlockSpec((4 * A, B_TILE), lambda i: (0, i))
    out_shape = jax.ShapeDtypeStruct((4 * A, Bp), jnp.float32)

    packed_out = pl.pallas_call(
        _actor_kernel,
        grid=grid,
        in_specs=in_specs,
        out_specs=out_specs,
        out_shape=out_shape,
        compiler_params=pltpu.CompilerParams(
            dimension_semantics=("parallel",),
            vmem_limit_bytes=32 * 1024 * 1024),
    )(state_t, noise_t, packed["w_in"], packed["b_in"],
      packed["w_hid"], packed["b_hid"], packed["w_out"], packed["b_out"])

    res = packed_out[:, :B].T                        # (B, 4A) — one cheap transpose
    action_sample = res[:, 0 * A:1 * A]
    action_logprob = res[:, 1 * A:2 * A]
    mean = res[:, 2 * A:3 * A]
    std = res[:, 3 * A:4 * A]
    return action_sample, action_logprob, mean, std


def init_params(key, state_dim, action_dim, hidden=_H):
    """Deterministic init matching shapes / init ranges of the torch module.

    Weights stored as (in, out) (transpose of torch's (out, in))."""
    ks = jax.random.split(key, 12)

    def linear(kw, kb, fan_in, fan_out):
        bound = 1.0 / math.sqrt(fan_in)
        w = jax.random.uniform(kw, (fan_in, fan_out), jnp.float32, -bound, bound)
        b = jax.random.uniform(kb, (fan_out,), jnp.float32, -bound, bound)
        return w, b

    w1, b1 = linear(ks[0], ks[1], state_dim, hidden)
    wf1, bf1 = linear(ks[2], ks[3], hidden, hidden)
    wf2, bf2 = linear(ks[4], ks[5], hidden, hidden)
    # mean_fc3: weight ~ U(-0.003, 0), bias default init
    wf3 = jax.random.uniform(ks[6], (hidden, action_dim), jnp.float32, -0.003, 0.0)
    bf3 = jax.random.uniform(ks[7], (action_dim,), jnp.float32,
                             -1.0 / math.sqrt(hidden), 1.0 / math.sqrt(hidden))
    wls, bls = linear(ks[8], ks[9], state_dim, hidden)
    # log_std1: weight ~ U(-0.003, 0.003), bias default init
    wls1 = jax.random.uniform(ks[10], (hidden, action_dim), jnp.float32, -0.003, 0.003)
    bls1 = jax.random.uniform(ks[11], (action_dim,), jnp.float32,
                              -1.0 / math.sqrt(hidden), 1.0 / math.sqrt(hidden))

    return {"w1": w1, "b1": b1, "wf1": wf1, "bf1": bf1, "wf2": wf2, "bf2": bf2,
            "wf3": wf3, "bf3": bf3, "wls": wls, "bls": bls,
            "wls1": wls1, "bls1": bls1}


def _reference_forward(state, noise, params):
    """Pure-JAX f32 reference (A == 2) mirroring the torch module."""
    relu = lambda v: jnp.maximum(v, 0.0)
    h = relu(state @ params["w1"] + params["b1"])
    h = relu(h @ params["wf1"] + params["bf1"])
    h = relu(h @ params["wf2"] + params["bf2"])
    m = h @ params["wf3"] + params["bf3"]
    mean = jnp.stack([jnp.tanh(m[:, 0]), jax.nn.sigmoid(m[:, 1])], axis=1)
    s = relu(state @ params["wls"] + params["bls"])
    s = s @ params["wls1"] + params["bls1"]
    sigma = jax.nn.softplus(s) + 1e-8
    sample = mean + sigma * noise
    sample = jnp.stack([jnp.clip(sample[:, 0], 0.3, 1.0),
                        jnp.clip(sample[:, 1], -1.0, 1.0)], axis=1)
    z = (sample - mean) / sigma
    logprob = -0.5 * z * z - jnp.log(sigma) - 0.5 * math.log(2.0 * math.pi)
    return sample, logprob, mean, sigma


if __name__ == "__main__":
    STATE_DIM = 8
    ACTION_DIM = 2
    BATCH = 8

    root = jax.random.PRNGKey(0)
    k_state, k_noise, k_params = jax.random.split(root, 3)

    state = jax.random.normal(k_state, (BATCH, STATE_DIM), jnp.float32)
    # N(0,1) noise for the reparameterized Normal sample (dist.sample())
    noise = jax.random.normal(k_noise, (BATCH, ACTION_DIM), jnp.float32)
    params = init_params(k_params, STATE_DIM, ACTION_DIM)

    packed = pack_params(params)          # one-time packing, outside the hot path
    jax.block_until_ready(packed)

    action_sample, action_logprob, mean, std = actor_forward(state, noise, packed)
    jax.block_until_ready((action_sample, action_logprob, mean, std))

    # shapes / clamp semantics
    assert action_sample.shape == (BATCH, ACTION_DIM)
    assert action_logprob.shape == (BATCH, ACTION_DIM)
    assert mean.shape == (BATCH, ACTION_DIM)
    assert std.shape == (BATCH, ACTION_DIM)
    assert bool(jnp.all(action_sample[:, 0] >= 0.3 - 1e-6))
    assert bool(jnp.all(action_sample[:, 0] <= 1.0 + 1e-6))
    assert bool(jnp.all(jnp.abs(action_sample[:, 1]) <= 1.0 + 1e-6))
    assert bool(jnp.all(std > 0.0))
    assert bool(jnp.all(jnp.isfinite(action_logprob)))

    # tolerance check vs f32 reference (kernel uses bf16 matmuls + approx recip)
    r_sample, r_logprob, r_mean, r_std = _reference_forward(state, noise, params)
    assert bool(jnp.allclose(mean, r_mean, atol=5e-2, rtol=5e-2))
    assert bool(jnp.allclose(std, r_std, atol=5e-2, rtol=5e-2))
    assert bool(jnp.allclose(action_sample, r_sample, atol=5e-2, rtol=5e-2))
    assert bool(jnp.allclose(action_logprob, r_logprob, atol=1e-1, rtol=5e-2))

    print("KERNEL_OK")
</pallas_src>

<mosaic_0001>
module attributes {stable_mosaic.version = 11 : i64} {
  func.func @_actor_kernel(%arg0: i32, %arg1: memref<8x8xf32, #tpu.memory_space<vmem>>, %arg2: memref<2x8xf32, #tpu.memory_space<vmem>>, %arg3: memref<128x8xbf16, #tpu.memory_space<vmem>>, %arg4: memref<128x1xf32, #tpu.memory_space<vmem>>, %arg5: memref<2x128x128xbf16, #tpu.memory_space<vmem>>, %arg6: memref<2x128x1xf32, #tpu.memory_space<vmem>>, %arg7: memref<4x128xbf16, #tpu.memory_space<vmem>>, %arg8: memref<4x1xf32, #tpu.memory_space<vmem>>, %arg9: memref<8x8xf32, #tpu.memory_space<vmem>>) attributes {dimension_semantics = [#tpu.dimension_semantics<parallel>], iteration_bounds = array<i64: 1>, scalar_prefetch = 0 : i64, scratch_operands = 0 : i64, tpu.core_type = #tpu.core_type<tc>, window_params = [{transform_indices = @transform_0, window_bounds = array<i64: 8, 8>}, {transform_indices = @transform_1, window_bounds = array<i64: 2, 8>}, {pipeline_mode = #tpu.pipeline_mode<synchronous>, transform_indices = @transform_2, window_bounds = array<i64: 128, 8>}, {pipeline_mode = #tpu.pipeline_mode<synchronous>, transform_indices = @transform_3, window_bounds = array<i64: 128, 1>}, {pipeline_mode = #tpu.pipeline_mode<synchronous>, transform_indices = @transform_4, window_bounds = array<i64: 2, 128, 128>}, {pipeline_mode = #tpu.pipeline_mode<synchronous>, transform_indices = @transform_5, window_bounds = array<i64: 2, 128, 1>}, {pipeline_mode = #tpu.pipeline_mode<synchronous>, transform_indices = @transform_6, window_bounds = array<i64: 4, 128>}, {pipeline_mode = #tpu.pipeline_mode<synchronous>, transform_indices = @transform_7, window_bounds = array<i64: 4, 1>}, {transform_indices = @transform_8, window_bounds = array<i64: 8, 8>}]} {
    %c0 = arith.constant 0 : index
    %c0_0 = arith.constant 0 : index
    %0 = vector.load %arg1[%c0, %c0_0] : memref<8x8xf32, #tpu.memory_space<vmem>>, vector<8x8xf32>
    %1 = arith.truncf %0 : vector<8x8xf32> to vector<8x8xbf16>
    %c0_1 = arith.constant 0 : index
    %c0_2 = arith.constant 0 : index
    %2 = vector.load %arg2[%c0_1, %c0_2] : memref<2x8xf32, #tpu.memory_space<vmem>>, vector<2x8xf32>
    %c0_3 = arith.constant 0 : index
    %c0_4 = arith.constant 0 : index
    %3 = vector.load %arg3[%c0_3, %c0_4] : memref<128x8xbf16, #tpu.memory_space<vmem>>, vector<128x8xbf16>
    %cst = arith.constant dense<0.000000e+00> : vector<128x8xf32>
    %4 = tpu.matmul %3, %1, %cst {dimension_numbers = #tpu.dot_dimension_numbers<[1], [0], [0], [1], [0, 0, 1, 1], [], []>} : vector<128x8xbf16>, vector<8x8xbf16>, vector<128x8xf32> -> vector<128x8xf32>
    %c0_5 = arith.constant 0 : index
    %c0_6 = arith.constant 0 : index
    %5 = vector.load %arg4[%c0_5, %c0_6] : memref<128x1xf32, #tpu.memory_space<vmem>>, vector<128x1xf32>
    %6 = vector.broadcast %5 : vector<128x1xf32> to vector<128x8xf32>
    %7 = arith.addf %4, %6 : vector<128x8xf32>
    %cst_7 = arith.constant 0.000000e+00 : f32
    %8 = vector.broadcast %cst_7 : f32 to vector<128x8xf32>
    %9 = arith.maximumf %7, %8 : vector<128x8xf32>
    %c0_8 = arith.constant 0 : index
    %c0_9 = arith.constant 0 : index
    %c0_10 = arith.constant 0 : index
    %10 = vector.load %arg5[%c0_8, %c0_9, %c0_10] : memref<2x128x128xbf16, #tpu.memory_space<vmem>>, vector<1x128x128xbf16>
    %11 = vector.shape_cast %10 : vector<1x128x128xbf16> to vector<128x128xbf16>
    %12 = arith.truncf %9 : vector<128x8xf32> to vector<128x8xbf16>
    %cst_11 = arith.constant dense<0.000000e+00> : vector<128x8xf32>
    %13 = tpu.matmul %11, %12, %cst_11 {dimension_numbers = #tpu.dot_dimension_numbers<[1], [0], [0], [1], [0, 0, 1, 1], [], []>} : vector<128x128xbf16>, vector<128x8xbf16>, vector<128x8xf32> -> vector<128x8xf32>
    %c0_12 = arith.constant 0 : index
    %c0_13 = arith.constant 0 : index
    %c0_14 = arith.constant 0 : index
    %14 = vector.load %arg6[%c0_12, %c0_13, %c0_14] : memref<2x128x1xf32, #tpu.memory_space<vmem>>, vector<1x128x1xf32>
    %15 = vector.shape_cast %14 : vector<1x128x1xf32> to vector<128x1xf32>
    %16 = vector.broadcast %15 : vector<128x1xf32> to vector<128x8xf32>
    %17 = arith.addf %13, %16 : vector<128x8xf32>
    %cst_15 = arith.constant 0.000000e+00 : f32
    %18 = vector.broadcast %cst_15 : f32 to vector<128x8xf32>
    %19 = arith.maximumf %17, %18 : vector<128x8xf32>
    %c1 = arith.constant 1 : index
    %c0_16 = arith.constant 0 : index
    %c0_17 = arith.constant 0 : index
    %20 = vector.load %arg5[%c1, %c0_16, %c0_17] : memref<2x128x128xbf16, #tpu.memory_space<vmem>>, vector<1x128x128xbf16>
    %21 = vector.shape_cast %20 : vector<1x128x128xbf16> to vector<128x128xbf16>
    %22 = arith.truncf %19 : vector<128x8xf32> to vector<128x8xbf16>
    %cst_18 = arith.constant dense<0.000000e+00> : vector<128x8xf32>
    %23 = tpu.matmul %21, %22, %cst_18 {dimension_numbers = #tpu.dot_dimension_numbers<[1], [0], [0], [1], [0, 0, 1, 1], [], []>} : vector<128x128xbf16>, vector<128x8xbf16>, vector<128x8xf32> -> vector<128x8xf32>
    %c1_19 = arith.constant 1 : index
    %c0_20 = arith.constant 0 : index
    %c0_21 = arith.constant 0 : index
    %24 = vector.load %arg6[%c1_19, %c0_20, %c0_21] : memref<2x128x1xf32, #tpu.memory_space<vmem>>, vector<1x128x1xf32>
    %25 = vector.shape_cast %24 : vector<1x128x1xf32> to vector<128x1xf32>
    %26 = vector.broadcast %25 : vector<128x1xf32> to vector<128x8xf32>
    %27 = arith.addf %23, %26 : vector<128x8xf32>
    %cst_22 = arith.constant 0.000000e+00 : f32
    %28 = vector.broadcast %cst_22 : f32 to vector<128x8xf32>
    %29 = arith.maximumf %27, %28 : vector<128x8xf32>
    %c0_23 = arith.constant 0 : index
    %c0_24 = arith.constant 0 : index
    %30 = vector.load %arg7[%c0_23, %c0_24] : memref<4x128xbf16, #tpu.memory_space<vmem>>, vector<4x128xbf16>
    %31 = arith.truncf %29 : vector<128x8xf32> to vector<128x8xbf16>
    %cst_25 = arith.constant dense<0.000000e+00> : vector<4x8xf32>
    %32 = tpu.matmul %30, %31, %cst_25 {dimension_numbers = #tpu.dot_dimension_numbers<[1], [0], [0], [1], [0, 0, 1, 1], [], []>} : vector<4x128xbf16>, vector<128x8xbf16>, vector<4x8xf32> -> vector<4x8xf32>
    %c0_26 = arith.constant 0 : index
    %c0_27 = arith.constant 0 : index
    %33 = vector.load %arg8[%c0_26, %c0_27] : memref<4x1xf32, #tpu.memory_space<vmem>>, vector<4x1xf32>
    %34 = vector.broadcast %33 : vector<4x1xf32> to vector<4x8xf32>
    %35 = arith.addf %32, %34 : vector<4x8xf32>
    %36 = vector.extract_strided_slice %35 {offsets = [0, 0], sizes = [2, 8], strides = [1, 1]} : vector<4x8xf32> to vector<2x8xf32>
    %37 = vector.extract_strided_slice %35 {offsets = [2, 0], sizes = [2, 8], strides = [1, 1]} : vector<4x8xf32> to vector<2x8xf32>
    %38 = tpu.iota {dimensions = array<i32: 0>} : vector<2x8xi32>
    %c1_i32 = arith.constant 1 : i32
    %39 = vector.broadcast %c1_i32 : i32 to vector<2x8xi32>
    %40 = arith.cmpi eq, %38, %39 : vector<2x8xi32>
    %cst_28 = arith.constant 5.000000e-01 : f32
    %cst_29 = arith.constant 1.000000e+00 : f32
    %41 = vector.broadcast %cst_28 : f32 to vector<2x8xf32>
    %42 = vector.broadcast %cst_29 : f32 to vector<2x8xf32>
    %43 = arith.select %40, %41, %42 : vector<2x8xi1>, vector<2x8xf32>
    %44 = arith.mulf %36, %43 : vector<2x8xf32>
    %45 = math.tanh %44 : vector<2x8xf32>
    %c0_i32 = arith.constant 0 : i32
    %46 = vector.broadcast %c0_i32 : i32 to vector<2x8xi32>
    %47 = arith.cmpi eq, %38, %46 : vector<2x8xi32>
    %cst_30 = arith.constant 1.000000e+00 : f32
    %48 = vector.broadcast %cst_30 : f32 to vector<2x8xf32>
    %49 = arith.addf %48, %45 : vector<2x8xf32>
    %cst_31 = arith.constant 5.000000e-01 : f32
    %50 = vector.broadcast %cst_31 : f32 to vector<2x8xf32>
    %51 = arith.mulf %50, %49 : vector<2x8xf32>
    %52 = arith.select %47, %45, %51 : vector<2x8xi1>, vector<2x8xf32>
    %cst_32 = arith.constant 0.000000e+00 : f32
    %53 = vector.broadcast %cst_32 : f32 to vector<2x8xf32>
    %54 = arith.maximumf %37, %53 : vector<2x8xf32>
    %55 = vector.broadcast %cst_32 : f32 to vector<2x8xf32>
    %56 = arith.subf %37, %55 : vector<2x8xf32>
    %57 = arith.cmpf one, %56, %56 : vector<2x8xf32>
    %58 = vector.broadcast %cst_32 : f32 to vector<2x8xf32>
    %59 = arith.addf %37, %58 : vector<2x8xf32>
    %60 = math.absf %56 : vector<2x8xf32>
    %cst_33 = arith.constant 0.000000e+00 : f32
    %61 = vector.broadcast %cst_33 : f32 to vector<2x8xf32>
    %62 = arith.subf %61, %60 : vector<2x8xf32>
    %63 = math.exp %62 : vector<2x8xf32>
    %64 = math.log1p %63 : vector<2x8xf32>
    %65 = arith.addf %54, %64 : vector<2x8xf32>
    %66 = arith.select %57, %59, %65 : vector<2x8xi1>, vector<2x8xf32>
    %cst_34 = arith.constant 9.99999993E-9 : f32
    %67 = vector.broadcast %cst_34 : f32 to vector<2x8xf32>
    %68 = arith.addf %66, %67 : vector<2x8xf32>
    %69 = arith.mulf %68, %2 : vector<2x8xf32>
    %70 = arith.addf %52, %69 : vector<2x8xf32>
    %c0_i32_35 = arith.constant 0 : i32
    %71 = vector.broadcast %c0_i32_35 : i32 to vector<2x8xi32>
    %72 = arith.cmpi eq, %38, %71 : vector<2x8xi32>
    %cst_36 = arith.constant 3.000000e-01 : f32
    %cst_37 = arith.constant -1.000000e+00 : f32
    %73 = vector.broadcast %cst_36 : f32 to vector<2x8xf32>
    %74 = vector.broadcast %cst_37 : f32 to vector<2x8xf32>
    %75 = arith.select %72, %73, %74 : vector<2x8xi1>, vector<2x8xf32>
    %cst_38 = arith.constant 1.000000e+00 : f32
    %76 = arith.maximumf %75, %70 : vector<2x8xf32>
    %77 = vector.broadcast %cst_38 : f32 to vector<2x8xf32>
    %78 = arith.minimumf %77, %76 : vector<2x8xf32>
    %79 = tpu.reciprocal %68 {approx = true} : vector<2x8xf32> -> vector<2x8xf32>
    %80 = arith.subf %78, %52 : vector<2x8xf32>
    %81 = arith.mulf %80, %79 : vector<2x8xf32>
    %cst_39 = arith.constant -5.000000e-01 : f32
    %82 = vector.broadcast %cst_39 : f32 to vector<2x8xf32>
    %83 = arith.mulf %82, %81 : vector<2x8xf32>
    %84 = arith.mulf %83, %81 : vector<2x8xf32>
    %85 = math.log %68 : vector<2x8xf32>
    %86 = arith.subf %84, %85 : vector<2x8xf32>
    %cst_40 = arith.constant 0.918938517 : f32
    %87 = vector.broadcast %cst_40 : f32 to vector<2x8xf32>
    %88 = arith.subf %86, %87 : vector<2x8xf32>
    %89 = tpu.concatenate %78, %88, %52, %68 in 0 : vector<2x8xf32>, vector<2x8xf32>, vector<2x8xf32>, vector<2x8xf32> -> vector<8x8xf32>
    %c0_41 = arith.constant 0 : index
    %c0_42 = arith.constant 0 : index
    %90 = vector.load %arg9[%c0_41, %c0_42] : memref<8x8xf32, #tpu.memory_space<vmem>>, vector<8x8xf32>
    tpu.vector_store %arg9[%c0_41, %c0_42], %89 {strides = array<i32>} : memref<8x8xf32, #tpu.memory_space<vmem>>, vector<8x8xf32>,
    return
  }
  func.func @transform_0(%arg0: i32) -> (i32, i32) {
    %c0_i32 = arith.constant 0 : i32
    %c0_i32_0 = arith.constant 0 : i32
    return %c0_i32, %arg0 : i32, i32
  }
  func.func @transform_1(%arg0: i32) -> (i32, i32) {
    %c0_i32 = arith.constant 0 : i32
    %c0_i32_0 = arith.constant 0 : i32
    return %c0_i32, %arg0 : i32, i32
  }
  func.func @transform_2(%arg0: i32) -> (i32, i32) {
    %c0_i32 = arith.constant 0 : i32
    %c0_i32_0 = arith.constant 0 : i32
    %c0_i32_1 = arith.constant 0 : i32
    return %c0_i32, %c0_i32_0 : i32, i32
  }
  func.func @transform_3(%arg0: i32) -> (i32, i32) {
    %c0_i32 = arith.constant 0 : i32
    %c0_i32_0 = arith.constant 0 : i32
    %c0_i32_1 = arith.constant 0 : i32
    return %c0_i32, %c0_i32_0 : i32, i32
  }
  func.func @transform_4(%arg0: i32) -> (i32, i32, i32) {
    %c0_i32 = arith.constant 0 : i32
    %c0_i32_0 = arith.constant 0 : i32
    %c0_i32_1 = arith.constant 0 : i32
    %c0_i32_2 = arith.constant 0 : i32
    return %c0_i32, %c0_i32_0, %c0_i32_1 : i32, i32, i32
  }
  func.func @transform_5(%arg0: i32) -> (i32, i32, i32) {
    %c0_i32 = arith.constant 0 : i32
    %c0_i32_0 = arith.constant 0 : i32
    %c0_i32_1 = arith.constant 0 : i32
    %c0_i32_2 = arith.constant 0 : i32
    return %c0_i32, %c0_i32_0, %c0_i32_1 : i32, i32, i32
  }
  func.func @transform_6(%arg0: i32) -> (i32, i32) {
    %c0_i32 = arith.constant 0 : i32
    %c0_i32_0 = arith.constant 0 : i32
    %c0_i32_1 = arith.constant 0 : i32
    return %c0_i32, %c0_i32_0 : i32, i32
  }
  func.func @transform_7(%arg0: i32) -> (i32, i32) {
    %c0_i32 = arith.constant 0 : i32
    %c0_i32_0 = arith.constant 0 : i32
    %c0_i32_1 = arith.constant 0 : i32
    return %c0_i32, %c0_i32_0 : i32, i32
  }
  func.func @transform_8(%arg0: i32) -> (i32, i32) {
    %c0_i32 = arith.constant 0 : i32
    %c0_i32_0 = arith.constant 0 : i32
    return %c0_i32, %arg0 : i32, i32
  }
}

</mosaic_0001>

<bundles_post_ra>
// kernel: actor_forward.1
= control target key start
LH: loop header
LB: loop body
LE: loop exit
PB: predicated region body
PF: predicated region fallthrough
CT: control target
= control target key end

     0   :  { %v1279_v0 = vmov 0   ;;  %vm210_vm0 = vcmask 1043456   ;;  %vm185_vm1 = vcmask 64512   ;;  %vm1281_vm2 = vmmov 0   ;;  %s1581_s3 = inlined_call_operand.vmem [shape: f32[128,1], index: 3, kind: input, shape index: {}]   ;;  %s1582_s0 = inlined_call_operand.vmem [shape: f32[8,8], index: 0, kind: input, shape index: {}]   ;;  %s1583_s2 = inlined_call_operand.vmem [shape: bf16[128,8], index: 2, kind: input, shape index: {}]   ;;  %s1584_s5 = inlined_call_operand.vmem [shape: f32[2,128,1], index: 5, kind: input, shape index: {}]   ;;  %s1585_s7 = inlined_call_operand.vmem [shape: f32[4,1], index: 7, kind: input, shape index: {}]   ;;  %s1586_s4 = inlined_call_operand.vmem [shape: bf16[2,128,128], index: 4, kind: input, shape index: {}]   ;;  %s1587_s6 = inlined_call_operand.vmem [shape: bf16[4,128], index: 6, kind: input, shape index: {}]   ;;  %s1588_s1 = inlined_call_operand.vmem [shape: f32[2,8], index: 1, kind: input, shape index: {}]   ;;  %s1589_s8 = inlined_call_operand.vmem [shape: f32[8,8], index: 8, kind: output, shape index: {}]  }
   0x1   :  { %1243 = vset.pattern.permute.xlu0 %v1279_v0  ;;  %1244 = vset.pattern.permute.xlu1 %v1279_v0  ;;  %v49_v1 = vld [vmem:[%s1581_s3] sm:$0xff]  ;;  %v51_v2 = vld [vmem:[%s1581_s3 + $0x10] sm:$0xff]  ;;  %v50_v5 = vld [vmem:[%s1581_s3 + $0x8] sm:$0xff]  ;;  %vm1010_vm7 = vcmask 1041408   ;;  %vm1013_vm8 = vcmask 1045504  }
   0x2   :  { %v30_v3 = vld [vmem:[%s1582_s0] sm:$0xff]  ;;  %67 = vperm.xlu0 %1243, %v49_v1   ;;  %77 = vperm.xlu1 %1244, %v51_v2   ;;  %v52_v6 = vld [vmem:[%s1581_s3 + $0x18] sm:$0xff]  ;;  %v1246_v9 = vld [vmem:[%s1583_s2 + $0x8] sm:$0xff]  }
   0x3   :  { %v31_v4 = vpack.c.bf16 %v30_v3, %v30_v3  ;;  %v1245_v7 = vld [vmem:[%s1583_s2] sm:$0xff]   ;;  %v1247_v11 = vld [vmem:[%s1583_s2 + $0x10] sm:$0xff]   ;;  %v54_v12 = vld [vmem:[%s1581_s3 + $0x28] sm:$0xff] }
   0x4   :  { %1137 = vmatprep.mubr.msk.bf16.mxu0 %vm185_vm1, %v1245_v7  ;;  %v53_v10 = vld [vmem:[%s1581_s3 + $0x20] sm:$0xff]  ;;  %v55_v13 = vld [vmem:[%s1581_s3 + $0x30] sm:$0xff]  ;;  %v56_v14 = vld [vmem:[%s1581_s3 + $0x38] sm:$0xff] }
   0x5   :  { %1237 = vmatprep.subr.msk.bf16.mxu0 %vm210_vm0, %v31_v4  ;;  %v212_v8 = vsel %vm210_vm0, %v31_v4, 0  ;;  %v1248_v15 = vld [vmem:[%s1583_s2 + $0x18] sm:$0xff]   ;;  %v1249_v16 = vld [vmem:[%s1583_s2 + $0x20] sm:$0xff]   ;;  %v58_v18 = vld [vmem:[%s1581_s3 + $0x48] sm:$0xff] }
   0x6   :  { %1136 = vmatpush3.bf16.msra.mxu0 %v212_v8  ;;  %72 = vperm.xlu0 %1243, %v50_v5   ;;  %v57_v17 = vld [vmem:[%s1581_s3 + $0x40] sm:$0xff]  ;;  %v59_v19 = vld [vmem:[%s1581_s3 + $0x50] sm:$0xff]  ;;  %v60_v20 = vld [vmem:[%s1581_s3 + $0x58] sm:$0xff] }
   0x7   :  { %82 = vperm.xlu1 %1244, %v52_v6   ;;  %v1250_v21 = vld [vmem:[%s1583_s2 + $0x28] sm:$0xff]   ;;  %v1251_v22 = vld [vmem:[%s1583_s2 + $0x30] sm:$0xff]   ;;  %v61_v23 = vld [vmem:[%s1581_s3 + $0x60] sm:$0xff] }
   0x8   :  { %v62_v24 = vld [vmem:[%s1581_s3 + $0x68] sm:$0xff]  ;;  %v63_v25 = vld [vmem:[%s1581_s3 + $0x70] sm:$0xff]  ;;  %v64_v26 = vld [vmem:[%s1581_s3 + $0x78] sm:$0xff] }
   0x9   :  { %1138 = vmatmul.mubr.msk.bf16.vlgmr.msra.gmra.mrb[0].mxu0 %vm185_vm1, %v1246_v9  ;;  %v1252_v27 = vld [vmem:[%s1583_s2 + $0x38] sm:$0xff]   ;;  %v351_v28 = vld [vmem:[%s1584_s5] sm:$0xff]  ;;  %v352_v29 = vld [vmem:[%s1584_s5 + $0x8] sm:$0xff] }
   0xa   :  { %1141 = vmatprep.mubr.msk.bf16.mxu0 %vm185_vm1, %v1247_v11  ;;  %87 = vperm.xlu0 %1243, %v53_v10   ;;  %v353_v30 = vld [vmem:[%s1584_s5 + $0x10] sm:$0xff]  ;;  %v354_v31 = vld [vmem:[%s1584_s5 + $0x18] sm:$0xff]  ;;  %v355_v32 = vld [vmem:[%s1584_s5 + $0x20] sm:$0xff] }
   0xb   :  { %92 = vperm.xlu1 %1244, %v54_v12   ;;  %v356_v33 = vld [vmem:[%s1584_s5 + $0x28] sm:$0xff]  ;;  %v357_v34 = vld [vmem:[%s1584_s5 + $0x30] sm:$0xff]  ;;  %v358_v35 = vld [vmem:[%s1584_s5 + $0x38] sm:$0xff] }
   0xc   :  { %v359_v36 = vld [vmem:[%s1584_s5 + $0x40] sm:$0xff]  ;;  %v360_v37 = vld [vmem:[%s1584_s5 + $0x48] sm:$0xff]  ;;  %v361_v38 = vld [vmem:[%s1584_s5 + $0x50] sm:$0xff] }
   0xd   :  { %v362_v39 = vld [vmem:[%s1584_s5 + $0x58] sm:$0xff]  ;;  %v363_v40 = vld [vmem:[%s1584_s5 + $0x60] sm:$0xff]  ;;  %v364_v41 = vld [vmem:[%s1584_s5 + $0x68] sm:$0xff] }
   0xe   :  { %97 = vperm.xlu0 %1243, %v55_v13   ;;  %v365_v42 = vld [vmem:[%s1584_s5 + $0x70] sm:$0xff]  ;;  %v366_v43 = vld [vmem:[%s1584_s5 + $0x78] sm:$0xff]  ;;  %v1060_v44 = vld [vmem:[%s1584_s5 + $0x80] sm:$0xff] }
   0xf   :  { %102 = vperm.xlu1 %1244, %v56_v14   ;;  %v1061_v45 = vld [vmem:[%s1584_s5 + $0x88] sm:$0xff]  ;;  %v1062_v46 = vld [vmem:[%s1584_s5 + $0x90] sm:$0xff]  ;;  %v1063_v47 = vld [vmem:[%s1584_s5 + $0x98] sm:$0xff] }
  0x10   :  { %v1064_v48 = vld [vmem:[%s1584_s5 + $0xa0] sm:$0xff]  ;;  %v1065_v49 = vld [vmem:[%s1584_s5 + $0xa8] sm:$0xff]  ;;  %v1066_v50 = vld [vmem:[%s1584_s5 + $0xb0] sm:$0xff] }
  0x11   :  { %1142 = vmatmul.mubr.msk.bf16.gmra.mrb[4].mxu0 %vm185_vm1, %v1248_v15  ;;  %v1067_v51 = vld [vmem:[%s1584_s5 + $0xb8] sm:$0xff]  ;;  %v1068_v52 = vld [vmem:[%s1584_s5 + $0xc0] sm:$0xff]  ;;  %v1069_v53 = vld [vmem:[%s1584_s5 + $0xc8] sm:$0xff] }
  0x12   :  { %1145 = vmatprep.mubr.msk.bf16.mxu0 %vm185_vm1, %v1249_v16  ;;  %107 = vperm.xlu0 %1243, %v57_v17   ;;  %v1070_v54 = vld [vmem:[%s1584_s5 + $0xd0] sm:$0xff]  ;;  %v1071_v55 = vld [vmem:[%s1584_s5 + $0xd8] sm:$0xff]  ;;  %v1072_v56 = vld [vmem:[%s1584_s5 + $0xe0] sm:$0xff] }
  0x13   :  { %112 = vperm.xlu1 %1244, %v58_v18   ;;  %v1073_v57 = vld [vmem:[%s1584_s5 + $0xe8] sm:$0xff]  ;;  %v1074_v58 = vld [vmem:[%s1584_s5 + $0xf0] sm:$0xff]  ;;  %v1075_v59 = vld [vmem:[%s1584_s5 + $0xf8] sm:$0xff] }
  0x14   :  { %v900_v60 = vld [vmem:[%s1585_s7] sm:$0xf] }
  0x15   :  { %v1253_v61 = vld [vmem:[%s1586_s4] sm:$0xff]  }
  0x16   :  { %117 = vperm.xlu0 %1243, %v59_v19   ;;  %1169 = vmatprep.mubr.bf16.mxu1 %v1253_v61 }
  0x17   :  { %122 = vperm.xlu1 %1244, %v60_v20  }
  0x19   :  { %1146 = vmatmul.mubr.msk.bf16.gmra.mrb[8].mxu0 %vm185_vm1, %v1250_v21 }
  0x1a   :  { %1149 = vmatprep.mubr.msk.bf16.mxu0 %vm185_vm1, %v1251_v22  ;;  %127 = vperm.xlu0 %1243, %v61_v23  }
  0x1b   :  { %132 = vperm.xlu1 %1244, %v62_v24  }
  0x1e   :  { %137 = vperm.xlu0 %1243, %v63_v25  }
  0x1f   :  { %142 = vperm.xlu1 %1244, %v64_v26  }
  0x21   :  { %1150 = vmatmul.mubr.msk.bf16.gmra.mrb[12].mxu0 %vm185_vm1, %v1252_v27 }
  0x22   :  { %369 = vperm.xlu0 %1243, %v351_v28  }
  0x23   :  { %374 = vperm.xlu1 %1244, %v352_v29  }
  0x26   :  { %379 = vperm.xlu0 %1243, %v353_v30  }
  0x27   :  { %384 = vperm.xlu1 %1244, %v354_v31  }
  0x2a   :  { %389 = vperm.xlu0 %1243, %v355_v32  }
  0x2b   :  { %394 = vperm.xlu1 %1244, %v356_v33  }
  0x2e   :  { %399 = vperm.xlu0 %1243, %v357_v34  }
  0x2f   :  { %404 = vperm.xlu1 %1244, %v358_v35  }
  0x32   :  { %409 = vperm.xlu0 %1243, %v359_v36  }
  0x33   :  { %414 = vperm.xlu1 %1244, %v360_v37  }
  0x36   :  { %419 = vperm.xlu0 %1243, %v361_v38  }
  0x37   :  { %424 = vperm.xlu1 %1244, %v362_v39  }
  0x3a   :  { %429 = vperm.xlu0 %1243, %v363_v40  }
  0x3b   :  { %434 = vperm.xlu1 %1244, %v364_v41  }
  0x3e   :  { %439 = vperm.xlu0 %1243, %v365_v42  }
  0x3f   :  { %444 = vperm.xlu1 %1244, %v366_v43  }
  0x42   :  { %652 = vperm.xlu0 %1243, %v1060_v44  }
  0x43   :  { %657 = vperm.xlu1 %1244, %v1061_v45  }
  0x46   :  { %662 = vperm.xlu0 %1243, %v1062_v46  }
  0x47   :  { %667 = vperm.xlu1 %1244, %v1063_v47  }
  0x4a   :  { %672 = vperm.xlu0 %1243, %v1064_v48  }
  0x4b   :  { %677 = vperm.xlu1 %1244, %v1065_v49  }
  0x4e   :  { %682 = vperm.xlu0 %1243, %v1066_v50  }
  0x4f   :  { %687 = vperm.xlu1 %1244, %v1067_v51  }
  0x52   :  { %692 = vperm.xlu0 %1243, %v1068_v52  }
  0x53   :  { %697 = vperm.xlu1 %1244, %v1069_v53  }
  0x56   :  { %702 = vperm.xlu0 %1243, %v1070_v54  }
  0x57   :  { %707 = vperm.xlu1 %1244, %v1071_v55  }
  0x5a   :  { %712 = vperm.xlu0 %1243, %v1072_v56  }
  0x5b   :  { %717 = vperm.xlu1 %1244, %v1073_v57  }
  0x5e   :  { %722 = vperm.xlu0 %1243, %v1074_v58  }
  0x5f   :  { %727 = vperm.xlu1 %1244, %v1075_v59  }
  0x62   :  { %903 = vperm.xlu0 %1243, %v900_v60  }
  0x81   :  { %v68_v62 = vpop.permute.xlu0 %67  ;;  %v78_v63 = vpop.permute.xlu1 %77 }
  0x85   :  { %v73_v0 = vpop.permute.xlu0 %72 }
  0x86   :  { %v83_v1 = vpop.permute.xlu1 %82 }
  0x89   :  { %v88_v2 = vpop.permute.xlu0 %87 }
  0x8a   :  { %v93_v3 = vpop.permute.xlu1 %92 }
  0x8d   :  { %v98_v4 = vpop.permute.xlu0 %97 }
  0x8e   :  { %v103_v8 = vpop.permute.xlu1 %102 }
  0x91   :  { %v108_v16 = vpop.permute.xlu0 %107 }
  0x92   :  { %v113_v20 = vpop.permute.xlu1 %112 }
  0x95   :  { %v118_v29 = vpop.permute.xlu0 %117 }
  0x96   :  { %v123_v33 = vpop.permute.xlu1 %122 }
  0x99   :  { %v128_v41 = vpop.permute.xlu0 %127 }
  0x9a   :  { %v133_v46 = vpop.permute.xlu1 %132 }
  0x9d   :  { %v138_v53 = vpop.permute.xlu0 %137 }
  0x9e   :  { %v143_v58 = vpop.permute.xlu1 %142 }
  0xdc   :  { %v1139_v5 = vpop.f32.mrb[0].mxu0 }
  0xdd   :  { %v257_v6 = vadd.f32 %v1139_v5, %v78_v63  ;;  %v248_v7 = vpop.f32.mrb[1].mxu0 }
  0xde   :  { %v249_v9 = vadd.f32 %v248_v7, %v68_v62  ;;  %v1140_v10 = vpop.f32.mrb[2].mxu0  ;;  %v1255_v7 = vld [vmem:[%s1586_s4 + $0x10] sm:$0xff]  }
  0xdf   :  { %v260_v11 = vadd.f32 %v1140_v10, %v83_v1  ;;  %v251_v12 = vpop.f32.mrb[3].mxu0  ;;  %v313_v14 = vmax.f32 %v257_v6, 0.0  ;;  %v1254_v6 = vld [vmem:[%s1586_s4 + $0x8] sm:$0xff]  }
  0xe0   :  { %v252_v13 = vadd.f32 %v251_v12, %v73_v0  ;;  %v311_v17 = vmax.f32 %v249_v9, 0.0  ;;  %v1257_v9 = vld [vmem:[%s1586_s4 + $0x20] sm:$0xff]   ;;  %v1258_v10 = vld [vmem:[%s1586_s4 + $0x28] sm:$0xff]   ;;  %v1260_v12 = vld [vmem:[%s1586_s4 + $0x38] sm:$0xff]  }
  0xe1   :  { %v314_v15 = vmax.f32 %v260_v11, 0.0  ;;  %v1259_v11 = vld [vmem:[%s1586_s4 + $0x30] sm:$0xff]  }
  0xe2   :  { %v312_v18 = vmax.f32 %v252_v13, 0.0  ;;  %v1261_v13 = vld [vmem:[%s1586_s4 + $0x40] sm:$0xff]  }
  0xe3   :  { %v344_v19 = vpack.c.bf16 %v314_v15, %v313_v14  ;;  %1201 = vmatprep.mubr.bf16.mxu0 %v1261_v13  ;;  %v370_v14 = vpop.permute.xlu0 %369  ;;  %v375_v15 = vpop.permute.xlu1 %374 }
  0xe4   :  { %v1143_v21 = vpop.f32.mrb[4].mxu0  ;;  %v343_v22 = vpack.c.bf16 %v312_v18, %v311_v17 }
  0xe5   :  { %v273_v23 = vadd.f32 %v1143_v21, %v98_v4  ;;  %v264_v24 = vpop.f32.mrb[5].mxu0 }
  0xe6   :  { %v265_v25 = vadd.f32 %v264_v24, %v88_v2  ;;  %v1144_v26 = vpop.f32.mrb[6].mxu0  ;;  %1153 = vmatprep.subr.bf16.mxu1 %v343_v22 }
  0xe7   :  { %v276_v27 = vadd.f32 %v1144_v26, %v103_v8  ;;  %v267_v28 = vpop.f32.mrb[7].mxu0  ;;  %1154 = vmatpush3.bf16.msra.mxu1 %v343_v22  ;;  %v317_v31 = vmax.f32 %v273_v23, 0.0  ;;  %v1256_v8 = vld [vmem:[%s1586_s4 + $0x18] sm:$0xff]   ;;  %v385_v17 = vpop.permute.xlu1 %384 }
  0xe8   :  { %v268_v30 = vadd.f32 %v267_v28, %v93_v3  ;;  %1155 = vmatprep.subr.bf16.mxu1 %v344_v19  ;;  %v315_v34 = vmax.f32 %v265_v25, 0.0 }
  0xe9   :  { %v318_v32 = vmax.f32 %v276_v27, 0.0 }
  0xea   :  { %v316_v35 = vmax.f32 %v268_v30, 0.0 }
  0xeb   :  { %v346_v36 = vpack.c.bf16 %v318_v32, %v317_v31  ;;  %1156 = vmatpush3.bf16.msra.mxu1 %v344_v19  ;;  %v395_v19 = vpop.permute.xlu1 %394 }
  0xec   :  { %v345_v37 = vpack.c.bf16 %v316_v35, %v315_v34  ;;  %v1147_v38 = vpop.f32.mrb[8].mxu0 }
  0xed   :  { %v289_v39 = vadd.f32 %v1147_v38, %v118_v29  ;;  %v280_v40 = vpop.f32.mrb[9].mxu0 }
  0xee   :  { %v281_v42 = vadd.f32 %v280_v40, %v108_v16  ;;  %v1148_v43 = vpop.f32.mrb[10].mxu0  ;;  %1157 = vmatprep.subr.bf16.mxu1 %v345_v37  ;;  %v380_v16 = vpop.permute.xlu0 %379 }
  0xef   :  { %v292_v44 = vadd.f32 %v1148_v43, %v123_v33  ;;  %v283_v45 = vpop.f32.mrb[11].mxu0  ;;  %1158 = vmatpush3.bf16.msra.mxu1 %v345_v37  ;;  %v321_v48 = vmax.f32 %v289_v39, 0.0  ;;  %v405_v24 = vpop.permute.xlu1 %404 }
  0xf0   :  { %v284_v47 = vadd.f32 %v283_v45, %v113_v20  ;;  %1159 = vmatprep.subr.bf16.mxu1 %v346_v36  ;;  %v319_v50 = vmax.f32 %v281_v42, 0.0 }
  0xf1   :  { %v322_v49 = vmax.f32 %v292_v44, 0.0 }
  0xf2   :  { %v320_v51 = vmax.f32 %v284_v47, 0.0  ;;  %v390_v18 = vpop.permute.xlu0 %389 }
  0xf3   :  { %v348_v52 = vpack.c.bf16 %v322_v49, %v321_v48  ;;  %1160 = vmatpush3.bf16.msra.mxu1 %v346_v36  ;;  %v415_v36 = vpop.permute.xlu1 %414 }
  0xf4   :  { %v347_v54 = vpack.c.bf16 %v320_v51, %v319_v50  ;;  %v1151_v55 = vpop.f32.mrb[12].mxu0 }
  0xf5   :  { %v305_v56 = vadd.f32 %v1151_v55, %v138_v53  ;;  %v296_v57 = vpop.f32.mrb[13].mxu0 }
  0xf6   :  { %v297_v59 = vadd.f32 %v296_v57, %v128_v41  ;;  %v1152_v60 = vpop.f32.mrb[14].mxu0  ;;  %1161 = vmatprep.subr.bf16.mxu1 %v347_v54  ;;  %v400_v20 = vpop.permute.xlu0 %399 }
  0xf7   :  { %v308_v61 = vadd.f32 %v1152_v60, %v143_v58  ;;  %v299_v62 = vpop.f32.mrb[15].mxu0  ;;  %1162 = vmatpush3.bf16.msra.mxu1 %v347_v54  ;;  %v325_v0 = vmax.f32 %v305_v56, 0.0  ;;  %v425_v49 = vpop.permute.xlu1 %424 }
  0xf8   :  { %v300_v63 = vadd.f32 %v299_v62, %v133_v46  ;;  %1163 = vmatprep.subr.bf16.mxu1 %v348_v52  ;;  %v323_v2 = vmax.f32 %v297_v59, 0.0 }
  0xf9   :  { %v326_v1 = vmax.f32 %v308_v61, 0.0 }
  0xfa   :  { %v324_v3 = vmax.f32 %v300_v63, 0.0  ;;  %v410_v32 = vpop.permute.xlu0 %409 }
  0xfb   :  { %v350_v4 = vpack.c.bf16 %v326_v1, %v325_v0  ;;  %1164 = vmatpush3.bf16.msra.mxu1 %v348_v52  ;;  %v435_v62 = vpop.permute.xlu1 %434 }
  0xfc   :  { %v349_v5 = vpack.c.bf16 %v324_v3, %v323_v2 }
  0xfe   :  { %1165 = vmatprep.subr.bf16.mxu1 %v349_v5  ;;  %v420_v45 = vpop.permute.xlu0 %419 }
  0xff   :  { %1166 = vmatpush3.bf16.msra.mxu1 %v349_v5 }
 0x100   :  { %1167 = vmatprep.subr.bf16.mxu1 %v350_v4 }
 0x102   :  { %v430_v57 = vpop.permute.xlu0 %429 }
 0x103   :  { %1168 = vmatpush3.bf16.msra.mxu1 %v350_v4 }
 0x106   :  { %1170 = vmatmul.mubr.bf16.vlgmr.msra.gmra.mrb[0].mxu1 %v1254_v6  ;;  %v440_v5 = vpop.permute.xlu0 %439 }
 0x107   :  { %1173 = vmatprep.mubr.bf16.mxu1 %v1255_v7 }
 0x10e   :  { %1174 = vmatmul.mubr.bf16.gmra.mrb[4].mxu1 %v1256_v8 }
 0x10f   :  { %1177 = vmatprep.mubr.bf16.mxu1 %v1257_v9 }
 0x116   :  { %1178 = vmatmul.mubr.bf16.gmra.mrb[8].mxu1 %v1258_v10  ;;  %v445_v10 = vpop.permute.xlu1 %444 }
 0x117   :  { %1181 = vmatprep.mubr.bf16.mxu1 %v1259_v11 }
 0x11e   :  { %1182 = vmatmul.mubr.bf16.gmra.mrb[12].mxu1 %v1260_v12 }
 0x1d9   :  { %v1171_v21 = vpop.f32.mrb[0].mxu1 }
 0x1da   :  { %v538_v22 = vadd.f32 %v1171_v21, %v380_v16  ;;  %v529_v23 = vpop.f32.mrb[1].mxu1 }
 0x1db   :  { %v530_v25 = vadd.f32 %v529_v23, %v370_v14  ;;  %v1172_v26 = vpop.f32.mrb[2].mxu1  ;;  %v1263_v23 = vld [vmem:[%s1586_s4 + $0x50] sm:$0xff]  }
 0x1dc   :  { %v541_v27 = vadd.f32 %v1172_v26, %v385_v17  ;;  %v532_v28 = vpop.f32.mrb[3].mxu1  ;;  %v594_v30 = vmax.f32 %v538_v22, 0.0  ;;  %v1262_v22 = vld [vmem:[%s1586_s4 + $0x48] sm:$0xff]  }
 0x1dd   :  { %v533_v29 = vadd.f32 %v532_v28, %v375_v15  ;;  %v592_v33 = vmax.f32 %v530_v25, 0.0  ;;  %v1265_v25 = vld [vmem:[%s1586_s4 + $0x60] sm:$0xff]   ;;  %v1266_v26 = vld [vmem:[%s1586_s4 + $0x68] sm:$0xff]   ;;  %v1268_v28 = vld [vmem:[%s1586_s4 + $0x78] sm:$0xff]  }
 0x1de   :  { %v595_v31 = vmax.f32 %v541_v27, 0.0  ;;  %v1267_v27 = vld [vmem:[%s1586_s4 + $0x70] sm:$0xff]  }
 0x1df   :  { %v593_v34 = vmax.f32 %v533_v29, 0.0  ;;  %v1280_v29 = vmov 0.0  }
 0x1e0   :  { %v626_v35 = vpack.c.bf16 %v595_v31, %v594_v30  ;;  %1217 = vmatprep.subr.bf16.mxu1 %v1280_v29  ;;  %1233 = vmatprep.mubr.msk.bf16.mxu1 %vm1281_vm2, %v1280_v29  ;;  %v653_v30 = vpop.permute.xlu0 %652  ;;  %v658_v31 = vpop.permute.xlu1 %657 }
 0x1e1   :  { %v625_v37 = vpack.c.bf16 %v593_v34, %v592_v33  ;;  %v1175_v38 = vpop.f32.mrb[4].mxu1 }
 0x1e2   :  { %v554_v39 = vadd.f32 %v1175_v38, %v400_v20  ;;  %v545_v40 = vpop.f32.mrb[5].mxu1 }
 0x1e3   :  { %v546_v41 = vadd.f32 %v545_v40, %v390_v18  ;;  %v1176_v42 = vpop.f32.mrb[6].mxu1  ;;  %1185 = vmatprep.subr.bf16.mxu0 %v625_v37 }
 0x1e4   :  { %v557_v43 = vadd.f32 %v1176_v42, %v405_v24  ;;  %v548_v44 = vpop.f32.mrb[7].mxu1  ;;  %1186 = vmatpush3.bf16.msra.mxu0 %v625_v37  ;;  %v598_v47 = vmax.f32 %v554_v39, 0.0  ;;  %v1264_v24 = vld [vmem:[%s1586_s4 + $0x58] sm:$0xff]   ;;  %v668_v33 = vpop.permute.xlu1 %667 }
 0x1e5   :  { %v549_v46 = vadd.f32 %v548_v44, %v395_v19  ;;  %1187 = vmatprep.subr.bf16.mxu0 %v626_v35  ;;  %v596_v50 = vmax.f32 %v546_v41, 0.0 }
 0x1e6   :  { %v599_v48 = vmax.f32 %v557_v43, 0.0 }
 0x1e7   :  { %v597_v51 = vmax.f32 %v549_v46, 0.0 }
 0x1e8   :  { %v628_v52 = vpack.c.bf16 %v599_v48, %v598_v47  ;;  %1188 = vmatpush3.bf16.msra.mxu0 %v626_v35  ;;  %v678_v35 = vpop.permute.xlu1 %677 }
 0x1e9   :  { %v627_v53 = vpack.c.bf16 %v597_v51, %v596_v50  ;;  %v1179_v54 = vpop.f32.mrb[8].mxu1 }
 0x1ea   :  { %v570_v55 = vadd.f32 %v1179_v54, %v420_v45  ;;  %v561_v56 = vpop.f32.mrb[9].mxu1 }
 0x1eb   :  { %v562_v58 = vadd.f32 %v561_v56, %v410_v32  ;;  %v1180_v59 = vpop.f32.mrb[10].mxu1  ;;  %1189 = vmatprep.subr.bf16.mxu0 %v627_v53  ;;  %v663_v32 = vpop.permute.xlu0 %662 }
 0x1ec   :  { %v573_v60 = vadd.f32 %v1180_v59, %v425_v49  ;;  %v564_v61 = vpop.f32.mrb[11].mxu1  ;;  %1190 = vmatpush3.bf16.msra.mxu0 %v627_v53  ;;  %v602_v0 = vmax.f32 %v570_v55, 0.0  ;;  %v688_v40 = vpop.permute.xlu1 %687 }
 0x1ed   :  { %v565_v63 = vadd.f32 %v564_v61, %v415_v36  ;;  %1191 = vmatprep.subr.bf16.mxu0 %v628_v52  ;;  %v600_v2 = vmax.f32 %v562_v58, 0.0 }
 0x1ee   :  { %v603_v1 = vmax.f32 %v573_v60, 0.0 }
 0x1ef   :  { %v601_v3 = vmax.f32 %v565_v63, 0.0  ;;  %v673_v34 = vpop.permute.xlu0 %672 }
 0x1f0   :  { %v630_v4 = vpack.c.bf16 %v603_v1, %v602_v0  ;;  %1192 = vmatpush3.bf16.msra.mxu0 %v628_v52  ;;  %v698_v52 = vpop.permute.xlu1 %697 }
 0x1f1   :  { %v629_v6 = vpack.c.bf16 %v601_v3, %v600_v2  ;;  %v1183_v7 = vpop.f32.mrb[12].mxu1 }
 0x1f2   :  { %v586_v8 = vadd.f32 %v1183_v7, %v440_v5  ;;  %v577_v9 = vpop.f32.mrb[13].mxu1 }
 0x1f3   :  { %v578_v11 = vadd.f32 %v577_v9, %v430_v57  ;;  %v1184_v12 = vpop.f32.mrb[14].mxu1  ;;  %1193 = vmatprep.subr.bf16.mxu0 %v629_v6  ;;  %v683_v36 = vpop.permute.xlu0 %682 }
 0x1f4   :  { %v589_v13 = vadd.f32 %v1184_v12, %v445_v10  ;;  %v580_v14 = vpop.f32.mrb[15].mxu1  ;;  %1194 = vmatpush3.bf16.msra.mxu0 %v629_v6  ;;  %v606_v16 = vmax.f32 %v586_v8, 0.0  ;;  %v708_v1 = vpop.permute.xlu1 %707 }
 0x1f5   :  { %v581_v15 = vadd.f32 %v580_v14, %v435_v62  ;;  %1195 = vmatprep.subr.bf16.mxu0 %v630_v4  ;;  %v604_v18 = vmax.f32 %v578_v11, 0.0 }
 0x1f6   :  { %v607_v17 = vmax.f32 %v589_v13, 0.0 }
 0x1f7   :  { %v605_v19 = vmax.f32 %v581_v15, 0.0  ;;  %v693_v48 = vpop.permute.xlu0 %692 }
 0x1f8   :  { %v632_v20 = vpack.c.bf16 %v607_v17, %v606_v16  ;;  %1196 = vmatpush3.bf16.msra.mxu0 %v630_v4  ;;  %v718_v14 = vpop.permute.xlu1 %717 }
 0x1f9   :  { %v631_v21 = vpack.c.bf16 %v605_v19, %v604_v18 }
 0x1fb   :  { %1197 = vmatprep.subr.bf16.mxu0 %v631_v21  ;;  %v703_v61 = vpop.permute.xlu0 %702 }
 0x1fc   :  { %1198 = vmatpush3.bf16.msra.mxu0 %v631_v21 }
 0x1fd   :  { %1199 = vmatprep.subr.bf16.mxu0 %v632_v20 }
 0x1ff   :  { %v713_v9 = vpop.permute.xlu0 %712 }
 0x200   :  { %1200 = vmatpush3.bf16.msra.mxu0 %v632_v20 }
 0x203   :  { %1202 = vmatmul.mubr.bf16.vlgmr.msra.gmra.mrb[16].mxu0 %v1262_v22  ;;  %v723_v21 = vpop.permute.xlu0 %722 }
 0x204   :  { %1205 = vmatprep.mubr.bf16.mxu0 %v1263_v23 }
 0x20b   :  { %1206 = vmatmul.mubr.bf16.gmra.mrb[20].mxu0 %v1264_v24 }
 0x20c   :  { %1209 = vmatprep.mubr.bf16.mxu0 %v1265_v25 }
 0x213   :  { %1210 = vmatmul.mubr.bf16.gmra.mrb[24].mxu0 %v1266_v26  ;;  %v728_v26 = vpop.permute.xlu1 %727 }
 0x214   :  { %1213 = vmatprep.mubr.bf16.mxu0 %v1267_v27 }
 0x21b   :  { %1214 = vmatmul.mubr.bf16.gmra.mrb[28].mxu0 %v1268_v28 }
 0x2d6   :  { %v1203_v37 = vpop.f32.mrb[16].mxu0 }
 0x2d7   :  { %v821_v38 = vadd.f32 %v1203_v37, %v663_v32  ;;  %v812_v39 = vpop.f32.mrb[17].mxu0 }
 0x2d8   :  { %v813_v41 = vadd.f32 %v812_v39, %v653_v30  ;;  %v1204_v42 = vpop.f32.mrb[18].mxu0  ;;  %v891_v39 = vld [vmem:[%s1587_s6] sm:$0x3] }
 0x2d9   :  { %v824_v43 = vadd.f32 %v1204_v42, %v668_v33  ;;  %v815_v44 = vpop.f32.mrb[19].mxu0  ;;  %v877_v46 = vmax.f32 %v821_v38, 0.0 }
 0x2da   :  { %v816_v45 = vadd.f32 %v815_v44, %v658_v31  ;;  %v875_v49 = vmax.f32 %v813_v41, 0.0 }
 0x2db   :  { %v878_v47 = vmax.f32 %v824_v43, 0.0 }
 0x2dc   :  { %v876_v50 = vmax.f32 %v816_v45, 0.0 }
 0x2dd   :  { %v893_v51 = vpack.c.bf16 %v878_v47, %v877_v46  ;;  %v946_v47 = vlaneseq }
 0x2de   :  { %v892_v53 = vpack.c.bf16 %v876_v50, %v875_v49  ;;  %v1207_v54 = vpop.f32.mrb[20].mxu0 }
 0x2df   :  { %v837_v55 = vadd.f32 %v1207_v54, %v683_v36  ;;  %v828_v56 = vpop.f32.mrb[21].mxu0  ;;  %v947_v50 = vshrl.u32 %v946_v47, 7 }
 0x2e0   :  { %v829_v57 = vadd.f32 %v828_v56, %v673_v34  ;;  %v1208_v58 = vpop.f32.mrb[22].mxu0  ;;  %1218 = vmatpush3.bf16.msra.mxu1 %v892_v53 }
 0x2e1   :  { %v840_v59 = vadd.f32 %v1208_v58, %v688_v40  ;;  %v831_v60 = vpop.f32.mrb[23].mxu0  ;;  %1219 = vmatprep.subr.bf16.mxu1 %v1280_v29  ;;  %v881_v63 = vmax.f32 %v837_v55, 0.0  ;;  %v904_v40 = vpop.permute.xlu0 %903  ;;  %vm948_vm3 = vcmp.eq.s32.totalorder %v947_v50, 1  ;;  %vm952_vm6 = vcmp.eq.s32.totalorder %v947_v50, 0 }
 0x2e2   :  { %v832_v62 = vadd.f32 %v831_v60, %v678_v35  ;;  %v879_v2 = vmax.f32 %v829_v57, 0.0 }
 0x2e3   :  { %v882_v0 = vmax.f32 %v840_v59, 0.0 }
 0x2e4   :  { %v880_v3 = vmax.f32 %v832_v62, 0.0  ;;  %1220 = vmatpush3.bf16.msra.mxu1 %v893_v51  ;;  %v32_v62 = vld [vmem:[%s1588_s1] sm:$0x3] }
 0x2e5   :  { %v895_v4 = vpack.c.bf16 %v882_v0, %v881_v63  ;;  %1221 = vmatprep.subr.bf16.mxu1 %v1280_v29 }
 0x2e6   :  { %v894_v5 = vpack.c.bf16 %v880_v3, %v879_v2  ;;  %v1211_v6 = vpop.f32.mrb[24].mxu0  ;;  %v976_v3 = vrot.slane %v32_v62, 6 }
 0x2e7   :  { %v853_v7 = vadd.f32 %v1211_v6, %v703_v61  ;;  %v844_v8 = vpop.f32.mrb[25].mxu0 }
 0x2e8   :  { %v845_v10 = vadd.f32 %v844_v8, %v693_v48  ;;  %v1212_v11 = vpop.f32.mrb[26].mxu0  ;;  %1222 = vmatpush3.bf16.msra.mxu1 %v894_v5 }
 0x2e9   :  { %v856_v12 = vadd.f32 %v1212_v11, %v708_v1  ;;  %v847_v13 = vpop.f32.mrb[27].mxu0  ;;  %1223 = vmatprep.subr.bf16.mxu1 %v1280_v29  ;;  %v885_v16 = vmax.f32 %v853_v7, 0.0 }
 0x2ea   :  { %v848_v15 = vadd.f32 %v847_v13, %v698_v52  ;;  %v883_v18 = vmax.f32 %v845_v10, 0.0  ;;  %v1283_v10 = vmov -1.0  }
 0x2eb   :  { %v886_v17 = vmax.f32 %v856_v12, 0.0  ;;  %v983_v11 = vsel %vm952_vm6, 0.3, %v1283_v10 }
 0x2ec   :  { %v884_v19 = vmax.f32 %v848_v15, 0.0  ;;  %1224 = vmatpush3.bf16.msra.mxu1 %v895_v4 }
 0x2ed   :  { %v897_v20 = vpack.c.bf16 %v886_v17, %v885_v16  ;;  %1225 = vmatprep.subr.bf16.mxu1 %v1280_v29 }
 0x2ee   :  { %v896_v22 = vpack.c.bf16 %v884_v19, %v883_v18  ;;  %v1215_v23 = vpop.f32.mrb[28].mxu0 }
 0x2ef   :  { %v869_v24 = vadd.f32 %v1215_v23, %v723_v21  ;;  %v860_v25 = vpop.f32.mrb[29].mxu0 }
 0x2f0   :  { %v861_v27 = vadd.f32 %v860_v25, %v713_v9  ;;  %v1216_v28 = vpop.f32.mrb[30].mxu0  ;;  %1226 = vmatpush3.bf16.msra.mxu1 %v896_v22 }
 0x2f1   :  { %v872_v30 = vadd.f32 %v1216_v28, %v728_v26  ;;  %v863_v31 = vpop.f32.mrb[31].mxu0  ;;  %1227 = vmatprep.subr.bf16.mxu1 %v1280_v29  ;;  %v889_v33 = vmax.f32 %v869_v24, 0.0 }
 0x2f2   :  { %v864_v32 = vadd.f32 %v863_v31, %v718_v14  ;;  %v887_v35 = vmax.f32 %v861_v27, 0.0 }
 0x2f3   :  { %v890_v34 = vmax.f32 %v872_v30, 0.0 }
 0x2f4   :  { %v888_v36 = vmax.f32 %v864_v32, 0.0  ;;  %1228 = vmatpush3.bf16.msra.mxu1 %v897_v20 }
 0x2f5   :  { %v899_v37 = vpack.c.bf16 %v890_v34, %v889_v33  ;;  %1229 = vmatprep.subr.bf16.mxu1 %v1280_v29 }
 0x2f6   :  { %v898_v38 = vpack.c.bf16 %v888_v36, %v887_v35 }
 0x2f8   :  { %1230 = vmatpush3.bf16.msra.mxu1 %v898_v38 }
 0x2f9   :  { %1231 = vmatprep.subr.bf16.mxu1 %v1280_v29  ;;  %v1282_v29 = vmov 1.0  }
 0x2fa   :  { %v949_v51 = vsel %vm948_vm3, 0.5, %v1282_v29 }
 0x2fc   :  { %1232 = vmatpush3.bf16.msra.mxu1 %v899_v37 }
 0x2ff   :  { %1234 = vmatmul.mubr.bf16.vlgmr.msra.gmra.mrb[16].mxu1 %v891_v39 }
 0x3d2   :  { %v940_v41 = vpop.f32.mrb[16].mxu1 }
 0x3d3   :  { %v941_v42 = vadd.f32 %v940_v41, %v904_v40  ;;  %v1235_v43 = vpop.f32.mrb[17].mxu1 }
 0x3d4   :  { %v943_v44 = vpop.f32.mrb[18].mxu1 }
 0x3d5   :  { %v959_v45 = vand.u32 2147483647, %v941_v42  ;;  %v1236_v46 = vpop.f32.mrb[19].mxu1  ;;  %v950_v53 = vmul.f32 %v949_v51, %v941_v42  ;;  %v956_v63 = vmax.f32 %v941_v42, 0.0  ;;  %vm957_vm5 = vcmp.ne.f32.partialorder %v941_v42, %v941_v42 }
 0x3d7   :  { %v960_v48 = vsub.f32 0.0, %v959_v45 }
 0x3d9   :  { %v961_v49 = vmul.f32 1.442695, %v960_v48 }
 0x3db   :  { %1269 = vpow2.f32 %v961_v49 }
 0x3e5   :  { %v1270_v52 = vpop.eup %1269 }
 0x3e6   :  { %v963_v54 = vadd.f32 1.0, %v1270_v52  ;;  %v966_v55 = vmul.f32 -0.5, %v1270_v52  ;;  %v969_v57 = vand.u32 2147483647, %v1270_v52 }
 0x3e8   :  { %1271 = vlog2.f32 %v963_v54  ;;  %v967_v56 = vadd.f32 1.0, %v966_v55  ;;  %vm970_vm4 = vcmp.lt.f32.partialorder %v969_v57, 0.0004427343 }
 0x3e9   :  { %1273 = vtanh.f32 %v950_v53 }
 0x3ea   :  { %v968_v61 = vmul.f32 %v1270_v52, %v967_v56 }
 0x3f2   :  { %v1272_v58 = vpop.eup %1271 }
 0x3f3   :  { %v1274_v59 = vpop.eup %1273  ;;  %v965_v60 = vmul.f32 0.6931472, %v1272_v58 }
 0x3f4   :  { %v953_v1 = vadd.f32 1.0, %v1274_v59 }
 0x3f5   :  { %v971_v0 = vsel %vm970_vm4, %v968_v61, %v965_v60 }
 0x3f6   :  { %v972_v2 = vadd.f32 %v971_v0, %v956_v63  ;;  %v954_v6 = vmul.f32 0.5, %v953_v1 }
 0x3f8   :  { %v973_v4 = vsel %vm957_vm5, %v941_v42, %v972_v2  ;;  %v955_v9 = vsel %vm952_vm6, %v1274_v59, %v954_v6 }
 0x3f9   :  { %v974_v5 = vadd.f32 1e-08, %v973_v4  ;;  %v1005_v27 = vrot.slane %v955_v9, 4 }
 0x3fb   :  { %v978_v7 = vmul.f32 %v976_v3, %v974_v5  ;;  %1275 = vrcp.f32 %v974_v5  ;;  %v1008_v28 = vrot.slane %v974_v5, 4 }
 0x3fc   :  { %1277 = vlog2.f32 %v974_v5 }
 0x3fd   :  { %v980_v8 = vrot.slane %v978_v7, 2 }
 0x3ff   :  { %v982_v12 = vadd.f32 %v980_v8, %v955_v9 }
 0x401   :  { %v984_v13 = vmax.f32 %v983_v11, %v982_v12 }
 0x403   :  { %v985_v14 = vmin.f32 %v984_v13, 1.0 }
 0x405   :  { %v1276_v15 = vpop.eup %1275  ;;  %v987_v16 = vsub.f32 %v985_v14, %v955_v9 }
 0x406   :  { %v1278_v17 = vpop.eup %1277  ;;  %v989_v18 = vrot.slane %v1276_v15, 2 }
 0x407   :  { %v995_v20 = vmul.f32 0.6931472, %v1278_v17 }
 0x408   :  { %v991_v19 = vmul.f32 %v989_v18, %v987_v16 }
 0x409   :  { %v997_v23 = vrot.slane %v995_v20, 2 }
 0x40a   :  { %v992_v21 = vmul.f32 -0.5, %v991_v19 }
 0x40c   :  { %v993_v22 = vmul.f32 %v992_v21, %v991_v19 }
 0x40e   :  { %v999_v24 = vsub.f32 %v993_v22, %v997_v23 }
 0x410   :  { %v1084_v25 = vadd.f32 -0.9189385, %v999_v24 }
 0x412   :  { %v1002_v26 = vrot.slane %v1084_v25, 6 }
 0x414   :  { %v1011_v30 = vsel %vm1010_vm7, %v985_v14, %v1002_v26 }
 0x415   :  { %v1012_v31 = vsel %vm210_vm0, %v1011_v30, %v1005_v27 }
 0x416   :  { %v1014_v32 = vsel %vm1013_vm8, %v1012_v31, %v1008_v28 }
 0x417   :  { %1015 = vst.msk [vmem:[%s1589_s8] sm:$0xff] %vm185_vm1, %v1014_v32 }

</bundles_post_ra>
